<compile_context>
chip_gen: v6e
topology: v6e:2x2x1
jax: 0.10.0
libtpu: 0.0.40
codegen_flags: <defaults>
</compile_context>

<pallas_src>
import math

import jax
import jax.numpy as jnp
from jax.experimental import pallas as pl
from jax.experimental.pallas import tpu as pltpu

_LANE = 128
_TARGET_BLOCK_BYTES = 2 * 1024 * 1024     # ~2 MiB per block (x6 in flight)
_VMEM_LIMIT_BYTES = 32 * 1024 * 1024      # safe on v5e/v6e/v7x


def _build_grid(height, width):
    """Replicates CartesianPositionalEmbedding.build_grid -> (4, H, W)."""
    coords_y = jnp.linspace(0.0, 1.0, height + 1)
    coords_x = jnp.linspace(0.0, 1.0, width + 1)
    coords_y = 0.5 * (coords_y[:-1] + coords_y[1:])
    coords_x = 0.5 * (coords_x[:-1] + coords_x[1:])
    grid_y, grid_x = jnp.meshgrid(coords_y, coords_x, indexing="ij")
    return jnp.stack((grid_x, grid_y, 1.0 - grid_x, 1.0 - grid_y), axis=0)


def _xavier_uniform_conv_weight(key, out_channels, in_channels):
    """xavier_uniform_ for a (out, in, 1, 1) conv weight -> returned as (out, in)."""
    fan_in = in_channels          # * 1 * 1 kernel
    fan_out = out_channels        # * 1 * 1 kernel
    bound = math.sqrt(6.0 / (fan_in + fan_out))
    return jax.random.uniform(
        key, (out_channels, in_channels), minval=-bound, maxval=bound,
        dtype=jnp.float32)


def _add_pe_kernel(x_ref, proj_ref, o_ref):
    # Pure VPU add over a fully-packed (rows, lanes) block; lane-dense store.
    o_ref[...] = (x_ref[...] + proj_ref[...]).astype(o_ref.dtype)


def _lane_divisors(hw):
    """All multiple-of-128 divisors of hw, ascending (hw is a 128-multiple)."""
    return [t for t in range(_LANE, hw + 1, _LANE) if hw % t == 0]


def _pick_lane_tile(hwp, rows, itemsize):
    """Largest multiple-of-128 divisor of hwp with rows*T*itemsize <= budget."""
    divs = _lane_divisors(hwp)
    budget_elems = max(_TARGET_BLOCK_BYTES // (rows * itemsize), _LANE)
    t = divs[0]
    for d in divs:
        if d <= budget_elems:
            t = d
    return t


def cartesian_positional_embedding(x_nchw, pe_4hw, weight_c4, bias_c, *,
                                   donate_x=False):
    """x_nchw: (B, C, H, W).  Returns (B, C, H, W) = x + conv1x1(pe)."""
    B, C, H, W = x_nchw.shape
    HW = H * W
    dtype = x_nchw.dtype
    itemsize = jnp.dtype(dtype).itemsize

    # Batch-invariant projection hoisted out of the grid loop; bias folded in.
    pe_flat = pe_4hw.reshape(4, HW)
    proj = (jnp.dot(weight_c4, pe_flat, preferred_element_type=jnp.float32)
            + bias_c[:, None]).astype(dtype)                        # (C, HW)

    x_flat = x_nchw.reshape(B, C, HW)

    # Pad the flattened spatial dim to a lane multiple: every store becomes an
    # unmasked lane-dense vst and no untiled fallback is needed.
    HWp = ((HW + _LANE - 1) // _LANE) * _LANE
    if HWp != HW:
        pad = HWp - HW
        x_flat = jnp.pad(x_flat, ((0, 0), (0, 0), (0, pad)))
        proj = jnp.pad(proj, ((0, 0), (0, pad)))

    compiler_params = pltpu.CompilerParams(
        dimension_semantics=("parallel", "parallel"),
        vmem_limit_bytes=_VMEM_LIMIT_BYTES)
    io_alias = {0: 0} if donate_x else {}

    # Row blocks of L = lcm(C, 8) rows over a flattened (B*C, HWp) view keep
    # every sublane busy even when C < 8; proj is tiled to L rows so one
    # constant proj block matches every row block.
    L = (C * 8) // math.gcd(C, 8)
    use_packed = (B * C) % L == 0

    if use_packed:
        R = L
        n_rb = (B * C) // R
        T = _pick_lane_tile(HWp, R, itemsize)
        n_t = HWp // T
        # v7x has 2 TensorCores: make sure there are >= 2 grid steps.
        if n_t * n_rb < 2:
            smaller = [d for d in _lane_divisors(HWp) if d < T]
            if smaller:
                T = smaller[-1]
                n_t = HWp // T

        x2 = x_flat.reshape(B * C, HWp)
        proj2 = jnp.tile(proj, (R // C, 1)) if R != C else proj      # (R, HWp)

        out2 = pl.pallas_call(
            _add_pe_kernel,
            out_shape=jax.ShapeDtypeStruct((B * C, HWp), dtype),
            grid_spec=pltpu.PrefetchScalarGridSpec(
                num_scalar_prefetch=0,
                # Row blocks innermost: the proj block index is constant
                # across them, so proj stays resident in VMEM per lane tile.
                grid=(n_t, n_rb),
                in_specs=[
                    pl.BlockSpec((R, T), lambda t, r: (r, t)),
                    pl.BlockSpec((R, T), lambda t, r: (0, t)),
                ],
                out_specs=pl.BlockSpec((R, T), lambda t, r: (r, t)),
            ),
            compiler_params=compiler_params,
            input_output_aliases=io_alias,
        )(x2, proj2)
        out_flat = out2.reshape(B, C, HWp)
    else:
        # Fallback (B*C not a multiple of lcm(C,8)): per-batch (C, T) blocks
        # with the batch dim squeezed; sublane-masked stores only when C % 8.
        T = _pick_lane_tile(HWp, C, itemsize)
        n_t = HWp // T
        out_flat = pl.pallas_call(
            _add_pe_kernel,
            out_shape=jax.ShapeDtypeStruct((B, C, HWp), dtype),
            grid_spec=pltpu.PrefetchScalarGridSpec(
                num_scalar_prefetch=0,
                grid=(n_t, B),   # batch innermost: proj resident per tile
                in_specs=[
                    pl.BlockSpec((pl.Squeezed(), C, T), lambda t, b: (b, 0, t)),
                    pl.BlockSpec((C, T), lambda t, b: (0, t)),
                ],
                out_specs=pl.BlockSpec((pl.Squeezed(), C, T),
                                       lambda t, b: (b, 0, t)),
            ),
            compiler_params=compiler_params,
            input_output_aliases=io_alias,
        )(x_flat, proj)

    if HWp != HW:
        out_flat = out_flat[..., :HW]
    return out_flat.reshape(B, C, H, W)


if __name__ == "__main__":
    key = jax.random.PRNGKey(0)
    k_x, k_w, k_x2, k_w2 = jax.random.split(key, 4)

    # Case 1: module-consistent small shapes (B=2, C=4, H=W=16).
    B, C, H, W = 2, 4, 16, 16
    weight = _xavier_uniform_conv_weight(k_w, C, 4)    # (C,4,1,1) conv -> (C,4)
    bias = jnp.zeros((C,), dtype=jnp.float32)          # nn.init.zeros_
    pe = _build_grid(H, W).astype(jnp.float32)         # (4, H, W) buffer
    x = jax.random.normal(k_x, (B, C, H, W), dtype=jnp.float32)

    out = jax.block_until_ready(
        cartesian_positional_embedding(x, pe, weight, bias))
    ref = x + (jnp.einsum("ck,khw->chw", weight, pe) + bias[:, None, None])[None]
    assert out.shape == (B, C, H, W)
    assert jnp.allclose(out, ref, atol=1e-5, rtol=1e-5)

    # Case 2: larger channel count + HW not a multiple of 128
    # (exercises the lane-padding and byte-budget tiling paths).
    B2, C2, H2, W2 = 2, 128, 20, 20
    weight2 = _xavier_uniform_conv_weight(k_w2, C2, 4)
    bias2 = jnp.zeros((C2,), dtype=jnp.float32)
    pe2 = _build_grid(H2, W2).astype(jnp.float32)
    x2 = jax.random.normal(k_x2, (B2, C2, H2, W2), dtype=jnp.float32)

    out2 = jax.block_until_ready(
        cartesian_positional_embedding(x2, pe2, weight2, bias2))
    ref2 = x2 + (jnp.einsum("ck,khw->chw", weight2, pe2)
                 + bias2[:, None, None])[None]
    assert out2.shape == (B2, C2, H2, W2)
    assert jnp.allclose(out2, ref2, atol=1e-5, rtol=1e-5)

    print("KERNEL_OK")
</pallas_src>

<mosaic_0001>
module attributes {stable_mosaic.version = 11 : i64} {
  func.func @_add_pe_kernel(%arg0: i32, %arg1: i32, %arg2: memref<8x128xf32, #tpu.memory_space<vmem>>, %arg3: memref<8x128xf32, #tpu.memory_space<vmem>>, %arg4: memref<8x128xf32, #tpu.memory_space<vmem>>) attributes {dimension_semantics = [#tpu.dimension_semantics<parallel>, #tpu.dimension_semantics<parallel>], iteration_bounds = array<i64: 2, 1>, scalar_prefetch = 0 : i64, scratch_operands = 0 : i64, tpu.core_type = #tpu.core_type<tc>, window_params = [{transform_indices = @transform_0, window_bounds = array<i64: 8, 128>}, {transform_indices = @transform_1, window_bounds = array<i64: 8, 128>}, {transform_indices = @transform_2, window_bounds = array<i64: 8, 128>}]} {
    %c0 = arith.constant 0 : index
    %c0_0 = arith.constant 0 : index
    %0 = vector.load %arg2[%c0, %c0_0] : memref<8x128xf32, #tpu.memory_space<vmem>>, vector<8x128xf32>
    %c0_1 = arith.constant 0 : index
    %c0_2 = arith.constant 0 : index
    %1 = vector.load %arg3[%c0_1, %c0_2] : memref<8x128xf32, #tpu.memory_space<vmem>>, vector<8x128xf32>
    %2 = arith.addf %0, %1 : vector<8x128xf32>
    %c0_3 = arith.constant 0 : index
    %c0_4 = arith.constant 0 : index
    %3 = vector.load %arg4[%c0_3, %c0_4] : memref<8x128xf32, #tpu.memory_space<vmem>>, vector<8x128xf32>
    tpu.vector_store %arg4[%c0_3, %c0_4], %2 {strides = array<i32>} : memref<8x128xf32, #tpu.memory_space<vmem>>, vector<8x128xf32>,
    return
  }
  func.func @transform_0(%arg0: i32, %arg1: i32) -> (i32, i32) {
    %c0_i32 = arith.constant 0 : i32
    return %arg1, %arg0 : i32, i32
  }
  func.func @transform_1(%arg0: i32, %arg1: i32) -> (i32, i32) {
    %c0_i32 = arith.constant 0 : i32
    %c0_i32_0 = arith.constant 0 : i32
    return %c0_i32, %arg0 : i32, i32
  }
  func.func @transform_2(%arg0: i32, %arg1: i32) -> (i32, i32) {
    %c0_i32 = arith.constant 0 : i32
    return %arg1, %arg0 : i32, i32
  }
}

</mosaic_0001>

<bundles_post_ra>
// kernel: tpu_custom_call.1
= control target key start
LH: loop header
LB: loop body
LE: loop exit
PB: predicated region body
PF: predicated region fallthrough
CT: control target
= control target key end

     0   :  { %7 = vsyncpa [#allocation3], 0  ;;  %s743_s0 = inlined_call_operand.hbm [shape: f32[8,256], index: 0, kind: input, shape index: {}]   ;;  %s744_s1 = inlined_call_operand.hbm [shape: f32[8,256], index: 1, kind: input, shape index: {}]   ;;  %s745_s2 = inlined_call_operand.hbm [shape: f32[8,256], index: 2, kind: output, shape index: {}]  }
   0x1   :  { %9 = vsyncpa [#allocation3 + $0x1], 0 }
   0x2   :  { %10 = vsyncpa [#allocation6], 0 }
   0x3   :  { %12 = vsyncpa [#allocation6 + $0x1], 0 }
   0x4   :  { %13 = vsyncpa [#allocation4], 0 }
   0x5   :  { %15 = vsyncpa [#allocation4 + $0x1], 0  ;;  %s582_s9 = smov 0   ;;  %s584_s10 = smov 0  }
   0x6   :  { %s586_s11 = smov 0   ;;  %s588_s12 = smov 0  }
   0x7   :  { %s590_s13 = smov 0   ;;  %s592_s14 = smov 0  }
   0x8 LB: > { %s339_s15 = sadd.s32 4294967295, %s562_s14   ;;  %s340_s16 = sadd.s32 4294967294, %s562_s14   ;;  %s562_s14 = sphi %s592_s14, %s21_s14   ;;  %s558_s13 = sphi %s590_s13, %s757_s13   ;;  %s554_s12 = sphi %s588_s12, %s756_s12   ;;  %s550_s11 = sphi %s586_s11, %s755_s11   ;;  %s546_s10 = sphi %s584_s10, %s754_s10   ;;  %s542_s9 = sphi %s582_s9, %s753_s9  }
   0x9   : > { %s33_s17 = sadd.s32 1, %s558_s13  ;;  %s42_s18 = sadd.s32 1, %s550_s11 }
   0xa   : > { %p35_p0 = scmp.ge.s32.totalorder %s33_s17, 2  ;;  %p49_p1 = scmp.ne.s32.totalorder %s550_s11, %s546_s10 }
   0xb   : > { %p50_p2 = scmp.eq.s32.totalorder %s562_s14, 0  ;;  %p55_p3 = scmp.ne.s32.totalorder %s546_s10, %s542_s9 }
   0xc   : > { %s759_s17 = smov (%p35_p0, %s33_s17), 0  ;;  %p56_p5 = scmp.eq.s32.totalorder %s339_s15, 0 }
   0xd   : > { %p623_p4 = por %p50_p2, %p49_p1  ;;  %s38_s20 = ssub.s32 %s558_s13, %s759_s17 }
   0xe   : > { %p107_p6 = scmp.eq.s32.totalorder %s339_s15, 1  ;;  %p40_p7 = scmp.eq.s32.totalorder %s38_s20, 0 }
   0xf   : > { %p629_p8 = por %p56_p5, %p55_p3  ;;  %p113_p10 = scmp.eq.s32.totalorder %s340_s16, 1 }
  0x10   : > { %p633_p9 = por %p107_p6, %p49_p1  ;;  %p372_p13 = scmp.lt.s32.totalorder %s562_s14, 2 }
  0x11   : > { %s638_s23 = scalar_select %p40_p7, %s550_s11, %s42_s18  }
  0x12   : > { %p640_p11 = por %p113_p10, %p55_p3  ;;  %s647_s25 = sand.u32 1, %s550_s11  }
  0x13   : > { %s343_s26 = sshll.u32 %s647_s25, 3  ;;  %s344_s27 = sshll.u32 %s558_s13, 7 }
  0x14   : > { %s144_s30 = scalar_lea.hbm %s743_s0, %s344_s27  ;;  %s137_s3 = scalar_lea.vmem [#allocation2], %s343_s26 }
  0x15   : > { %s146_s4 = sshll.u32 %s137_s3, 4  ;;  %p656_p0 = pnand %p372_p13, %p623_p4  ;;  %s147_s4 = int_to_ptr.vmem [resolvable:$true] %s146_s4 }
  0x16   : > { %p347_p1 = scmp.ge.s32.totalorder %s562_s14, 1  ;;  %p169_p2 = scmp.lt.s32.totalorder %s562_s14, 3 }
  0x17   : > { %s134_s6 = scalar_lea.sflag [#allocation3], %s647_s25  ;;  %p424_p3 = pneg %p656_p0 }
  0x18   : > { %s435_s7 = scalar_lea.vmem %s147_s4, 128  ;;  %s564_s8 = smov [#allocation2]  }
  0x19   : > { %p436_p5 = scmp.ne.s32.totalorder %s147_s4, %s435_s7  ;;  %s440_s15 = sshll.u32 %s564_s8, 4  ;;  %s441_s15 = int_to_ptr.vmem [resolvable:$false] %s440_s15 }
  0x1a   : > { %s442_s16 = scalar_lea.vmem %s441_s15, 256  ;;  %p443_p4 = scmp.lt.s32.totalorder %s147_s4, %s441_s15 }
  0x1b   : > { %p438_p6 = pnand %p436_p5, %p424_p3  ;;  %p444_p10 = scmp.lt.s32.totalorder %s442_s16, %s435_s7 }
  0x1d   : > { %p439_p7 = pneg %p438_p6  ;;  %p445_p13 = por %p444_p10, %p443_p4 }
  0x1f   : > { %p446_p12 = pnand %p445_p13, %p439_p7 }
  0x21   : > { %449 = shalt.err (!%p446_p12)
}
  0x22   : > { %364 = dma.hbm_to_vmem [thread:$0]  (!%p656_p0), %s144_s30, 128, %s147_s4, %s134_s6  }
  0x23   : > { %p674_p5 = pnand %p347_p1, %p169_p2  ;;  %s162_s28 = scalar_lea.hbm %s744_s1, %s344_s27 }
  0x24   : > { %s157_s29 = scalar_lea.vmem [#allocation5], %s343_s26  ;;  %s154_s7 = scalar_lea.sflag [#allocation6], %s647_s25 }
  0x25   : > { %s164_s3 = sshll.u32 %s157_s29, 4  ;;  %s565_s30 = smov [#allocation5]   ;;  %s165_s3 = int_to_ptr.vmem [resolvable:$true] %s164_s3 }
  0x26   : > { %s463_s8 = scalar_lea.vmem %s165_s3, 128  ;;  %s468_s4 = sshll.u32 %s565_s30, 4  ;;  %s469_s4 = int_to_ptr.vmem [resolvable:$false] %s468_s4 }
  0x27   : > { %p464_p12 = scmp.ne.s32.totalorder %s165_s3, %s463_s8  ;;  %s470_s6 = scalar_lea.vmem %s469_s4, 256 }
  0x28   : > { %p471_p1 = scmp.lt.s32.totalorder %s165_s3, %s469_s4  ;;  %p472_p2 = scmp.lt.s32.totalorder %s470_s6, %s463_s8 }
  0x29   : > { %p466_p6 = pnand %p464_p12, %p424_p3 }
  0x2a   : > { %p473_p4 = por %p472_p2, %p471_p1 }
  0x2b   : > { %p467_p7 = pneg %p466_p6 }
  0x2d   : > { %p474_p10 = pnand %p473_p4, %p467_p7 }
  0x2f   : > { %477 = shalt.err (!%p474_p10)
}
  0x30   : > { %367 = dma.hbm_to_vmem [thread:$0]  (!%p656_p0), %s162_s28, 128, %s165_s3, %s154_s7  }
  0x31   : > { %173 = sbr.rel (%p674_p5) target bundleno = 81 (0x51), region = 28  ;;  %s690_s25 = sand.u32 (!%p674_p5), 1, %s546_s10  }
  0x32   : > { %s348_s26 = sshll.u32 (!%p674_p5), %s690_s25, 3  ;;  %s176_s27 = scalar_lea.sflag (!%p674_p5), [#allocation3], %s690_s25 }
  0x33   : > { %s179_s15 = scalar_lea.vmem (!%p674_p5), [#allocation2], %s348_s26 }
  0x36   : > { %529 = dma.done.wait (%p629_p8), %s176_s27, 128  }
  0x37   : > { %531 = vsyncadd (%p629_p8), %s176_s27, 4294967168  ;;  %s185_s5 = scalar_lea.sflag [#allocation6], %s690_s25  ;;  %s188_s16 = scalar_lea.vmem [#allocation5], %s348_s26 }
  0x38   : > { %533 = dma.done.wait (%p629_p8), %s185_s5, 128  }
  0x39   : > { %535 = vsyncadd (%p629_p8), %s185_s5, 4294967168  ;;  %s213_s18 = scalar_lea.vmem [#allocation7], %s348_s26  ;;  %s352_s20 = sshll.u32 %s554_s12, 7  ;;  %v214_v0 = vld [vmem:[%s179_s15] sm:$0xff]  ;;  %v215_v1 = vld [vmem:[%s188_s16] sm:$0xff] }
  0x3a   : > { %s234_s19 = sshll.u32 %s213_s18, 4  ;;  %v216_v2 = vadd.f32 %v215_v1, %v214_v0  ;;  %s232_s3 = scalar_lea.hbm %s745_s2, %s352_s20  ;;  %s235_s19 = int_to_ptr.vmem [resolvable:$true] %s234_s19 }
  0x3b   : > { %s219_s7 = scalar_lea.sflag [#allocation4], %s690_s25  ;;  %s478_s8 = scalar_lea.vmem %s235_s19, 128 }
  0x3c   : > { %217 = vst [vmem:[%s213_s18] sm:$0xff] %v216_v2  ;;  %p479_p0 = scmp.ne.s32.totalorder %s235_s19, %s478_s8  ;;  %s566_s21 = smov [#allocation7]  }
  0x3d   : > { %s482_s30 = sshll.u32 %s566_s21, 4  ;;  %s483_s30 = int_to_ptr.vmem [resolvable:$false] %s482_s30 }
  0x3e   : > { %p480_p8 = pnand %p479_p0, %p633_p9  ;;  %s484_s4 = scalar_lea.vmem %s483_s30, 256 }
  0x3f   : > { %p485_p13 = scmp.lt.s32.totalorder %s235_s19, %s483_s30  ;;  %p486_p5 = scmp.lt.s32.totalorder %s484_s4, %s478_s8 }
  0x40   : > { %p481_p3 = pneg %p480_p8 }
  0x41   : > { %p487_p12 = por %p486_p5, %p485_p13 }
  0x43   : > { %p488_p6 = pnand %p487_p12, %p481_p3 }
  0x45   : > { %491 = shalt.err (!%p488_p6)
}
  0x46   : > { %s492_s12 = scalar_lea.hbm %s232_s3, 128  ;;  %s496_s26 = scalar_lea.hbm %s745_s2, 256 }
  0x47   : > { %p493_p7 = scmp.ne.s32.totalorder %s232_s3, %s492_s12  ;;  %p497_p4 = scmp.lt.s32.totalorder %s232_s3, %s745_s2 }
  0x48   : > { %p498_p10 = scmp.lt.s32.totalorder %s496_s26, %s492_s12 }
  0x49   : > { %p494_p1 = pnand %p493_p7, %p633_p9 }
  0x4a   : > { %p499_p0 = por %p498_p10, %p497_p4 }
  0x4b   : > { %p495_p2 = pneg %p494_p1 }
  0x4d   : > { %p500_p8 = pnand %p499_p0, %p495_p2 }
  0x4f   : > { %503 = shalt.err (!%p500_p8)
}
  0x50   : > { %359 = dma.vmem_to_hbm [thread:$0]  (%p633_p9), %s235_s19, 128, %s232_s3, %s219_s7  }
  0x51 PF: > { %s246_s5 = sand.u32 1, %s542_s9   ;;  %p752_p3 = scmp.ge.s32.totalorder %s562_s14, 2 }
  0x52   : > { %s247_s16 = scalar_lea.sflag [#allocation4], %s246_s5 }
  0x53   : > { %p369_p13 = pnand %p752_p3, %p640_p11 }
  0x55   : > { %p370_p5 = pneg %p369_p13 }
  0x57   : > { %537 = dma.done.wait (%p370_p5), %s247_s16, 128  }
  0x58   : > { %539 = vsyncadd (%p370_p5), %s247_s16, 4294967168  ;;  %s21_s14 = sadd.s32 1, %s562_s14   ;;  %s753_s9 = smov %s546_s10 }
  0x59   : > { %p18_p12 = scmp.ge.s32.totalorder %s21_s14, 4   ;;  %s754_s10 = smov %s550_s11 }
  0x5a   : > { %s755_s11 = smov %s638_s23  ;;  %s756_s12 = smov %s558_s13 }
  0x5b   : > { %s757_s13 = smov %s759_s17  ;;  %20 = sbr.rel (!%p18_p12) target bundleno = 8 (0x8), region = 86 }
  0x60   :  { %252 = vsyncpa [#allocation3], 1 }
  0x61   :  { %254 = vsyncpa [#allocation3 + $0x1], 1 }
  0x62   :  { %255 = vsyncpa [#allocation6], 1 }
  0x63   :  { %257 = vsyncpa [#allocation6 + $0x1], 1 }
  0x64   :  { %258 = vsyncpa [#allocation4], 1 }
  0x65   :  { %260 = vsyncpa [#allocation4 + $0x1], 1 }

</bundles_post_ra>
